<compile_context>
chip_gen: v7x
topology: tpu7x:2x2x1
jax: 0.10.0
libtpu: 0.0.40
codegen_flags: <defaults>
</compile_context>

<pallas_src>
import jax
import jax.numpy as jnp
from jax.experimental import pallas as pl
from jax.experimental.pallas import tpu as pltpu


def _copy_kernel(x_ref, o_ref):
    # Plain element-wise copy of the current VMEM tile.
    o_ref[...] = x_ref[...]


_TILE_BYTES_TARGET = 4 * 1024 * 1024   # ~4 MiB per tile
_VMEM_LIMIT_BYTES = 32 * 1024 * 1024   # 16 MiB working set + headroom, OK on v5e/v6e/v7x
_MIN_SPLIT_BYTES = 2 * 1024 * 1024     # split into >=2 grid steps above this (v7x megacore)


def _sublane_align(itemsize):
    # Sub-32-bit dtypes pack along sublanes: require 32-byte-worth of rows.
    return max(8, 32 // max(int(itemsize), 1))


def _divisors(m):
    out = set()
    d = 1
    while d * d <= m:
        if m % d == 0:
            out.add(d)
            out.add(m // d)
        d += 1
    return sorted(out)


def _copy_2d(x2d, block_r, block_c, grid_axis):
    """Tiled Pallas copy over a 2-D view with a cdiv grid (ragged tail masked)."""
    R, C = x2d.shape
    if grid_axis == 0:
        grid = (pl.cdiv(R, block_r),)
        index_map = lambda i: (i, 0)
    else:
        grid = (pl.cdiv(C, block_c),)
        index_map = lambda i: (0, i)

    return pl.pallas_call(
        _copy_kernel,
        out_shape=jax.ShapeDtypeStruct((R, C), x2d.dtype),
        grid_spec=pltpu.PrefetchScalarGridSpec(
            num_scalar_prefetch=0,
            grid=grid,
            in_specs=[pl.BlockSpec((block_r, block_c), index_map)],
            out_specs=pl.BlockSpec((block_r, block_c), index_map),
        ),
        compiler_params=pltpu.CompilerParams(
            dimension_semantics=("parallel",),   # shardable across v7x's 2 TCs
            vmem_limit_bytes=_VMEM_LIMIT_BYTES,
        ),
    )(x2d)


def _plan_row_tiling(n, itemsize):
    """Choose (rows, cols, block_r) for a contiguous, lane-dense row-tiled copy.

    Returns None when n is not a multiple of 128 (handled by the fallback path).
    """
    if n % 128 != 0:
        return None
    sub = _sublane_align(itemsize)
    cols_opts = [128 * d for d in _divisors(n // 128)]
    # Only widths whose minimum (sub x cols) block still fits the tile budget.
    fit = [c for c in cols_opts if c * itemsize * sub <= _TILE_BYTES_TARGET]
    aligned = [c for c in fit if (n // c) % sub == 0]
    if aligned:
        cols = max(aligned)          # widest lane-dense view with aligned rows
    elif fit:
        cols = max(fit)
    else:
        cols = min(cols_opts)        # unreachable in practice (128 always fits)
    rows = n // cols

    row_bytes = cols * itemsize
    block_r = max(sub, (_TILE_BYTES_TARGET // row_bytes) // sub * sub)
    if block_r >= rows:
        if n * itemsize >= _MIN_SPLIT_BYTES and rows >= 2 * sub:
            # Whole array would be one tile: split so megacore has >=2 steps.
            block_r = max(sub, ((rows + 1) // 2) // sub * sub)
        else:
            block_r = rows           # full-extent block (always legal)
    return rows, cols, block_r


def _copy_flat_fallback(x_flat):
    """Copy path for sizes with no factor of 128: column-tiled (1, n) view."""
    n = x_flat.shape[0]
    itemsize = jnp.dtype(x_flat.dtype).itemsize
    x2d = x_flat.reshape(1, n)
    # A (1, block_c) block is padded to 8 sublanes in VMEM, so budget for 8x.
    block_c = (_TILE_BYTES_TARGET // (8 * itemsize)) // 128 * 128
    block_c = max(128, block_c)
    if block_c >= n:
        block_c = n                  # small array: single full-extent block
    y2d = _copy_2d(x2d, 1, block_c, grid_axis=1)
    return y2d.reshape(n)


def identity(in_tensor, *ignore_args, **ignore_kwargs):
    """Identity.forward: return the input unchanged (fastest copy is no copy)."""
    return in_tensor


def identity_copy(in_tensor, *ignore_args, **ignore_kwargs):
    """Materialized identity: copy the input through a Pallas TPU kernel."""
    x = jnp.asarray(in_tensor)
    if x.size == 0:
        return x
    orig_shape = x.shape
    n = int(x.size)
    itemsize = jnp.dtype(x.dtype).itemsize

    plan = _plan_row_tiling(n, itemsize)
    if plan is None:
        y = _copy_flat_fallback(x.reshape(n))
    else:
        rows, cols, block_r = plan
        y = _copy_2d(x.reshape(rows, cols), block_r, cols, grid_axis=0)
    return y.reshape(orig_shape)


if __name__ == "__main__":
    key = jax.random.PRNGKey(0)
    # NCHW input, small shapes consistent with a conv-style module.
    x = jax.random.normal(key, (2, 4, 16, 16), dtype=jnp.float32)

    # Fast path: the module's forward is a no-op; return the input as-is.
    y_fast = identity(x, "ignored_positional", some_kwarg=123)
    assert y_fast is x

    # Kernel path: explicit materialized copy through the Pallas kernel.
    y = identity_copy(x, "ignored_positional", some_kwarg=123)
    y = jax.block_until_ready(y)
    assert y.shape == x.shape
    assert y.dtype == x.dtype
    assert jnp.array_equal(y, x)

    # Exercise the non-128-divisible fallback with a small ragged size.
    z = jax.random.normal(jax.random.PRNGKey(1), (3, 5, 7), dtype=jnp.float32)
    z_out = jax.block_until_ready(identity_copy(z))
    assert jnp.array_equal(z_out, z)

    print("KERNEL_OK")
</pallas_src>

<mosaic_0001>
module attributes {stable_mosaic.version = 11 : i64} {
  func.func @_copy_kernel(%arg0: i32, %arg1: memref<8x256xf32, #tpu.memory_space<vmem>>, %arg2: memref<8x256xf32, #tpu.memory_space<vmem>>) attributes {dimension_semantics = [#tpu.dimension_semantics<parallel>], iteration_bounds = array<i64: 1>, scalar_prefetch = 0 : i64, scratch_operands = 0 : i64, tpu.core_type = #tpu.core_type<tc>, window_params = [{transform_indices = @transform_0, window_bounds = array<i64: 8, 256>}, {transform_indices = @transform_1, window_bounds = array<i64: 8, 256>}]} {
    %c0 = arith.constant 0 : index
    %c0_0 = arith.constant 0 : index
    %0 = vector.load %arg1[%c0, %c0_0] : memref<8x256xf32, #tpu.memory_space<vmem>>, vector<8x256xf32>
    %c0_1 = arith.constant 0 : index
    %c0_2 = arith.constant 0 : index
    %1 = vector.load %arg2[%c0_1, %c0_2] : memref<8x256xf32, #tpu.memory_space<vmem>>, vector<8x256xf32>
    tpu.vector_store %arg2[%c0_1, %c0_2], %0 {strides = array<i32>} : memref<8x256xf32, #tpu.memory_space<vmem>>, vector<8x256xf32>,
    return
  }
  func.func @transform_0(%arg0: i32) -> (i32, i32) {
    %c0_i32 = arith.constant 0 : i32
    %c0_i32_0 = arith.constant 0 : i32
    return %arg0, %c0_i32 : i32, i32
  }
  func.func @transform_1(%arg0: i32) -> (i32, i32) {
    %c0_i32 = arith.constant 0 : i32
    %c0_i32_0 = arith.constant 0 : i32
    return %arg0, %c0_i32 : i32, i32
  }
}

</mosaic_0001>

<bundles_post_ra>
// kernel: tpu_custom_call.1
= control target key start
LH: loop header
LB: loop body
LE: loop exit
PB: predicated region body
PF: predicated region fallthrough
CT: control target
= control target key end

     0   :  { %6 = vsyncpa [#allocation3], 0  ;;  %s126_s0 = inlined_call_operand.hbm [shape: f32[8,256], index: 0, kind: input, shape index: {}]   ;;  %s127_s1 = inlined_call_operand.hbm [shape: f32[8,256], index: 1, kind: output, shape index: {}]  }
   0x1   :  { %7 = vsyncpa [#allocation4], 0  ;;  %s90_s6 = smov [#allocation2]   ;;  %s42_s10 = scalar_lea.hbm %s126_s0, 256 }
   0x2   :  { %s14_s7 = sshll.u32 %s90_s6, 4  ;;  %p43_p0 = scmp.ne.s32.totalorder %s126_s0, %s42_s10  ;;  %s15_s7 = int_to_ptr.vmem [resolvable:$true] %s14_s7 }
   0x3   :  { %p46_p1 = scmp.lt.u32.totalorder %s42_s10, %s126_s0 }
   0x5   :  { %p48_p2 = pnand %p46_p1, %p43_p0 }
   0x7   :  { %51 = shalt.err (!%p48_p2)
}
   0x8   :  { %s52_s15 = scalar_lea.vmem %s15_s7, 256  ;;  %p57_p4 = scmp.lt.s32.totalorder %s15_s7, %s15_s7 }
   0x9   :  { %p53_p3 = scmp.ne.s32.totalorder %s15_s7, %s52_s15  ;;  %p58_p5 = scmp.lt.s32.totalorder %s52_s15, %s52_s15 }
   0xb   :  { %p59_p6 = por %p58_p5, %p57_p4 }
   0xd   :  { %p60_p7 = pnand %p59_p6, %p53_p3 }
   0xf   :  { %63 = shalt.err (!%p60_p7)
}
  0x10   :  { %17 = dma.hbm_to_vmem [thread:$0]  %s126_s0, 256, %s15_s7, [#allocation3]  }
  0x11   :  { %86 = dma.done.wait [#allocation3], 256  }
  0x12   :  { %87 = vsyncadd [#allocation3], 4294967040  ;;  %s91_s18 = smov [#allocation5]   ;;  %v21_v0 = vld [vmem:[#allocation2] sm:$0xff]  ;;  %v22_v1 = vld [vmem:[#allocation2 + $0x8] sm:$0xff] }
  0x13   :  { %s31_s19 = sshll.u32 %s91_s18, 4  ;;  %23 = vst [vmem:[#allocation5] sm:$0xff] %v21_v0  ;;  %24 = vst [vmem:[#allocation5 + $0x8] sm:$0xff] %v22_v1  ;;  %s32_s19 = int_to_ptr.vmem [resolvable:$true] %s31_s19 }
  0x14   :  { %s64_s20 = scalar_lea.vmem %s32_s19, 256  ;;  %p69_p9 = scmp.lt.s32.totalorder %s32_s19, %s32_s19 }
  0x15   :  { %p65_p8 = scmp.ne.s32.totalorder %s32_s19, %s64_s20  ;;  %p70_p10 = scmp.lt.s32.totalorder %s64_s20, %s64_s20 }
  0x17   :  { %p71_p11 = por %p70_p10, %p69_p9 }
  0x19   :  { %p72_p12 = pnand %p71_p11, %p65_p8 }
  0x1b   :  { %75 = shalt.err (!%p72_p12)
}
  0x1c   :  { %s76_s0 = scalar_lea.hbm %s127_s1, 256 }
  0x1d   :  { %p77_p13 = scmp.ne.s32.totalorder %s127_s1, %s76_s0  ;;  %p80_p0 = scmp.lt.u32.totalorder %s76_s0, %s127_s1 }
  0x1f   :  { %p82_p1 = pnand %p80_p0, %p77_p13 }
  0x21   :  { %85 = shalt.err (!%p82_p1)
}
  0x22   :  { %34 = dma.vmem_to_hbm [thread:$0]  %s32_s19, 256, %s127_s1, [#allocation4]  }
  0x23   :  { %88 = dma.done.wait [#allocation4], 256  }
  0x24   :  { %89 = vsyncadd [#allocation4], 4294967040 }
  0x25   :  { %38 = vsyncpa [#allocation3], 1 }
  0x26   :  { %39 = vsyncpa [#allocation4], 1 }

</bundles_post_ra>
